<compile_context>
chip_gen: v6e
topology: v6e:2x2x1
jax: 0.10.0
libtpu: 0.0.40
codegen_flags: <defaults>
</compile_context>

<pallas_src>
import jax
import jax.numpy as jnp
from jax.experimental import pallas as pl
from jax.experimental.pallas import tpu as pltpu

# Scoped-VMEM request: safe on v5e/v6e (128 MiB physical) and v7x (64 MiB physical).
_VMEM_LIMIT_BYTES = 32 * 1024 * 1024
# Per-block cap: with double-buffered input + output (+ tiny resident bias)
# peak VMEM stays ~4x this, well under the limit on every chip.
_MAX_BLOCK_BYTES = 4 * 1024 * 1024


def _pick_batch_tile(rows, row_bytes, sublane_constrained, max_block_bytes):
    """Largest batch tile whose block stays under max_block_bytes.

    If the full extent fits, use it (full-extent blocks are always layout-legal).
    Otherwise keep the tile a multiple of 8 when it maps to the sublane dim.
    """
    if rows * row_bytes <= max_block_bytes:
        return rows
    tb = max(1, max_block_bytes // row_bytes)
    if sublane_constrained:
        tb = max(8, (tb // 8) * 8)
    return min(tb, rows)


def _add_bias_2d_kernel(x_ref, b_ref, o_ref):
    # x_ref: (TB, C), b_ref: (1, C) -> broadcast add over the batch tile.
    o_ref[...] = x_ref[...] + b_ref[...]


def _add_bias_3d_kernel(x_ref, b_ref, o_ref):
    # x_ref: (TB, C, HW), b_ref: (1, C, 1) -> broadcast add over batch and H*W.
    o_ref[...] = x_ref[...] + b_ref[...]


def add_bias(x, bias_param, *, max_block_bytes=_MAX_BLOCK_BYTES):
    """Forward pass of AddBias.

    bias_param: shape (C, 1), matching the stored nn.Parameter.
    x: either (B, C) or (B, C, H, W) (NCHW).

    NOTE: for the tiny shapes in the test harness a fused XLA `x + bias` will
    beat any standalone kernel; this Pallas version is sized for large B.
    """
    C = bias_param.shape[0]
    itemsize = jnp.dtype(x.dtype).itemsize
    compiler_params = pltpu.CompilerParams(
        dimension_semantics=("parallel",),
        vmem_limit_bytes=_VMEM_LIMIT_BYTES,
    )

    if x.ndim == 2:
        # bias = self._bias.t().view(1, -1)  -> lane-contiguous (1, C)
        B, F = x.shape
        assert F == C, f"feature dim {F} != bias dim {C}"
        b2 = bias_param.reshape(1, C).astype(x.dtype)

        tb = _pick_batch_tile(B, C * itemsize, sublane_constrained=True,
                              max_block_bytes=max_block_bytes)
        grid = (pl.cdiv(B, tb),)
        return pl.pallas_call(
            _add_bias_2d_kernel,
            out_shape=jax.ShapeDtypeStruct(x.shape, x.dtype),
            grid=grid,
            in_specs=[
                pl.BlockSpec((tb, C), lambda i: (i, 0)),
                pl.BlockSpec((1, C), lambda i: (0, 0)),   # bias stays resident
            ],
            out_specs=pl.BlockSpec((tb, C), lambda i: (i, 0)),
            compiler_params=compiler_params,
        )(x, b2)

    # bias = self._bias.t().view(1, -1, 1, 1) -> flatten H*W into the lane dim
    assert x.ndim == 4, f"AddBias expects 2D or 4D input, got {x.ndim}D"
    B, Cx, H, W = x.shape
    assert Cx == C, f"channel dim {Cx} != bias dim {C}"
    HW = H * W

    x3 = x.reshape(B, C, HW)                       # lane-dense last dim
    b3 = bias_param.reshape(1, C, 1).astype(x.dtype)

    tb = _pick_batch_tile(B, C * HW * itemsize, sublane_constrained=False,
                          max_block_bytes=max_block_bytes)
    grid = (pl.cdiv(B, tb),)
    out3 = pl.pallas_call(
        _add_bias_3d_kernel,
        out_shape=jax.ShapeDtypeStruct((B, C, HW), x.dtype),
        grid=grid,
        in_specs=[
            pl.BlockSpec((tb, C, HW), lambda i: (i, 0, 0)),
            pl.BlockSpec((1, C, 1), lambda i: (0, 0, 0)),  # bias stays resident
        ],
        out_specs=pl.BlockSpec((tb, C, HW), lambda i: (i, 0, 0)),
        compiler_params=compiler_params,
    )(x3, b3)
    return out3.reshape(B, C, H, W)


if __name__ == "__main__":
    key = jax.random.PRNGKey(0)
    k_bias, k_x2, k_x4, k_x2b = jax.random.split(key, 4)

    # AddBias.__init__ takes a bias vector of length C, stored as (C, 1).
    C = 4
    bias_vec = jax.random.normal(k_bias, (C,), dtype=jnp.float32)
    bias_param = bias_vec[:, None]  # (C, 1) == bias.unsqueeze(1)

    # --- 2D case: x of shape (B, C) -----------------------------------------
    B = 2
    x2 = jax.random.normal(k_x2, (B, C), dtype=jnp.float32)
    out2 = jax.block_until_ready(add_bias(x2, bias_param))
    ref2 = x2 + bias_vec[None, :]
    assert out2.shape == x2.shape and out2.dtype == x2.dtype
    assert jnp.allclose(out2, ref2, atol=1e-6, rtol=1e-6)

    # --- 4D case: x of shape (B, C, H, W) (NCHW) -----------------------------
    H = W = 16
    x4 = jax.random.normal(k_x4, (B, C, H, W), dtype=jnp.float32)
    out4 = jax.block_until_ready(add_bias(x4, bias_param))
    ref4 = x4 + bias_vec[None, :, None, None]
    assert out4.shape == x4.shape and out4.dtype == x4.dtype
    assert jnp.allclose(out4, ref4, atol=1e-6, rtol=1e-6)

    # --- tiled / ragged 2D path (forces >1 grid step + partial final block) --
    B2 = 20
    x2b = jax.random.normal(k_x2b, (B2, C), dtype=jnp.float32)
    out2b = jax.block_until_ready(
        add_bias(x2b, bias_param, max_block_bytes=8 * C * 4))  # tb=8 -> grid=3
    ref2b = x2b + bias_vec[None, :]
    assert out2b.shape == x2b.shape
    assert jnp.allclose(out2b, ref2b, atol=1e-6, rtol=1e-6)

    print("KERNEL_OK")
</pallas_src>

<mosaic_0001>
module attributes {stable_mosaic.version = 11 : i64} {
  func.func @_add_bias_2d_kernel(%arg0: i32, %arg1: memref<2x4xf32, #tpu.memory_space<vmem>>, %arg2: memref<1x4xf32, #tpu.memory_space<vmem>>, %arg3: memref<2x4xf32, #tpu.memory_space<vmem>>) attributes {dimension_semantics = [#tpu.dimension_semantics<parallel>], iteration_bounds = array<i64: 1>, scalar_prefetch = 0 : i64, scratch_operands = 0 : i64, tpu.core_type = #tpu.core_type<tc>, window_params = [{transform_indices = @transform_0, window_bounds = array<i64: 2, 4>}, {pipeline_mode = #tpu.pipeline_mode<synchronous>, transform_indices = @transform_1, window_bounds = array<i64: 1, 4>}, {transform_indices = @transform_2, window_bounds = array<i64: 2, 4>}]} {
    %c0 = arith.constant 0 : index
    %c0_0 = arith.constant 0 : index
    %0 = vector.load %arg1[%c0, %c0_0] : memref<2x4xf32, #tpu.memory_space<vmem>>, vector<2x4xf32>
    %c0_1 = arith.constant 0 : index
    %c0_2 = arith.constant 0 : index
    %1 = vector.load %arg2[%c0_1, %c0_2] : memref<1x4xf32, #tpu.memory_space<vmem>>, vector<1x4xf32>
    %2 = vector.broadcast %1 : vector<1x4xf32> to vector<2x4xf32>
    %3 = arith.addf %0, %2 : vector<2x4xf32>
    %c0_3 = arith.constant 0 : index
    %c0_4 = arith.constant 0 : index
    %4 = vector.load %arg3[%c0_3, %c0_4] : memref<2x4xf32, #tpu.memory_space<vmem>>, vector<2x4xf32>
    tpu.vector_store %arg3[%c0_3, %c0_4], %3 {strides = array<i32>} : memref<2x4xf32, #tpu.memory_space<vmem>>, vector<2x4xf32>,
    return
  }
  func.func @transform_0(%arg0: i32) -> (i32, i32) {
    %c0_i32 = arith.constant 0 : i32
    %c0_i32_0 = arith.constant 0 : i32
    return %arg0, %c0_i32 : i32, i32
  }
  func.func @transform_1(%arg0: i32) -> (i32, i32) {
    %c0_i32 = arith.constant 0 : i32
    %c0_i32_0 = arith.constant 0 : i32
    %c0_i32_1 = arith.constant 0 : i32
    return %c0_i32, %c0_i32_0 : i32, i32
  }
  func.func @transform_2(%arg0: i32) -> (i32, i32) {
    %c0_i32 = arith.constant 0 : i32
    %c0_i32_0 = arith.constant 0 : i32
    return %arg0, %c0_i32 : i32, i32
  }
}

</mosaic_0001>

<bundles_post_ra>
// kernel: tpu_custom_call.1
= control target key start
LH: loop header
LB: loop body
LE: loop exit
PB: predicated region body
PF: predicated region fallthrough
CT: control target
= control target key end

     0   :  { %7 = vsyncpa [#allocation3], 0  ;;  %s123_s0 = inlined_call_operand.hbm [shape: f32[2,4], index: 0, kind: input, shape index: {}]   ;;  %s124_s1 = inlined_call_operand.vmem [shape: f32[1,4], index: 1, kind: input, shape index: {}]   ;;  %s125_s2 = inlined_call_operand.hbm [shape: f32[2,4], index: 2, kind: output, shape index: {}]  }
   0x1   :  { %8 = vsyncpa [#allocation4], 0  ;;  %s97_s9 = smov [#allocation2]  }
   0x2   :  { %s15_s10 = sshll.u32 %s97_s9, 4  ;;  %s16_s10 = int_to_ptr.vmem [resolvable:$true] %s15_s10 }
   0x3   :  { %s61_s11 = scalar_lea.vmem %s16_s10, 32  ;;  %p66_p1 = scmp.lt.s32.totalorder %s16_s10, %s16_s10 }
   0x4   :  { %p62_p0 = scmp.ne.s32.totalorder %s16_s10, %s61_s11  ;;  %p67_p2 = scmp.lt.s32.totalorder %s61_s11, %s61_s11 }
   0x6   :  { %p68_p3 = por %p67_p2, %p66_p1 }
   0x8   :  { %p69_p4 = pnand %p68_p3, %p62_p0 }
   0xa   :  { %72 = shalt.err (!%p69_p4)
}
   0xb   :  { %18 = dma.hbm_to_vmem [thread:$0]  %s123_s0, 32, %s16_s10, [#allocation3]  }
   0xc   :  { %93 = dma.done.wait [#allocation3], 32  }
   0xd   :  { %94 = vsyncadd [#allocation3], 4294967264  ;;  %s98_s14 = smov [#allocation5]   ;;  %v24_v0 = vld [vmem:[#allocation2] sm:$0x3]  ;;  %vm33_vm0 = vcmask 25600  }
   0xe   :  { %s41_s15 = sshll.u32 %s98_s14, 4  ;;  %v50_v1 = vld [vmem:[%s124_s1] ss:$0 sm:$0xff]  ;;  %s42_s15 = int_to_ptr.vmem [resolvable:$true] %s41_s15 }
   0xf   :  { %v32_v2 = vadd.f32 %v50_v1, %v24_v0  ;;  %s73_s18 = scalar_lea.vmem %s42_s15, 32  ;;  %p78_p6 = scmp.lt.s32.totalorder %s42_s15, %s42_s15 }
  0x10   :  { %p74_p5 = scmp.ne.s32.totalorder %s42_s15, %s73_s18  ;;  %p79_p7 = scmp.lt.s32.totalorder %s73_s18, %s73_s18 }
  0x11   :  { %34 = vst.msk [vmem:[#allocation5] sm:$0x3] %vm33_vm0, %v32_v2 }
  0x12   :  { %p80_p8 = por %p79_p7, %p78_p6 }
  0x14   :  { %p81_p9 = pnand %p80_p8, %p74_p5 }
  0x16   :  { %84 = shalt.err (!%p81_p9)
}
  0x17   :  { %44 = dma.vmem_to_hbm [thread:$0]  %s42_s15, 32, %s125_s2, [#allocation4]  }
  0x18   :  { %95 = dma.done.wait [#allocation4], 32  }
  0x19   :  { %96 = vsyncadd [#allocation4], 4294967264 }
  0x1a   :  { %48 = vsyncpa [#allocation3], 1 }
  0x1b   :  { %49 = vsyncpa [#allocation4], 1 }

</bundles_post_ra>
